<compile_context>
chip_gen: v5e
topology: v5e:2x2
jax: 0.10.0
libtpu: 0.0.40
codegen_flags: <defaults>
</compile_context>

<pallas_src>
from functools import partial

import jax
import jax.numpy as jnp
from jax.experimental import pallas as pl
from jax.experimental.pallas import tpu as pltpu


def _round_up(a, b):
    return (a + b - 1) // b * b


def ffn_kernel(x_ref, w1_ref, w2_ref, p_ref, o_ref, *, h_dim):
    hp = x_ref.shape[-1]
    x = x_ref[...]                                   # (tm, Hp), native dtype

    b1 = p_ref[0:1, :].astype(jnp.float32)
    b2 = p_ref[1:2, :].astype(jnp.float32)
    gamma = p_ref[2:3, :].astype(jnp.float32)
    beta = p_ref[3:4, :].astype(jnp.float32)

    # W_1(x) -> ReLU.  Native-dtype operands into the MXU, f32 accumulation.
    h = jnp.dot(x, w1_ref[...], preferred_element_type=jnp.float32) + b1
    h = jnp.maximum(h, 0.0)

    # W_2(.) + residual.  Cast h back to the weight dtype (no-op for f32).
    y = jnp.dot(h.astype(w2_ref.dtype), w2_ref[...],
                preferred_element_type=jnp.float32) + b2
    y = y + x.astype(jnp.float32)

    # LayerNorm over the real H columns only (padded columns of y are exactly 0
    # because x, W1, W2, b1, b2 are zero-padded).
    if h_dim == hp:
        mean = jnp.mean(y, axis=-1, keepdims=True)
        centered = y - mean
        var = jnp.mean(centered * centered, axis=-1, keepdims=True)
    else:
        col = jax.lax.broadcasted_iota(jnp.int32, (1, hp), 1)
        mask = (col < h_dim).astype(jnp.float32)
        inv_h = 1.0 / h_dim
        mean = jnp.sum(y, axis=-1, keepdims=True) * inv_h
        centered = (y - mean) * mask
        var = jnp.sum(centered * centered, axis=-1, keepdims=True) * inv_h

    inv = jax.lax.rsqrt(var + 1e-6)
    out = centered * inv * gamma + beta
    o_ref[...] = out.astype(o_ref.dtype)


def positionwise_feed_forward(x, w1, b1, w2, b2, gamma, beta, *, tm=None):
    """x: [B, S, H]; w1/w2: [H, H] (in, out); b1/b2/gamma/beta: [H]."""
    B, S, H = x.shape
    M = B * S
    dt = x.dtype

    row_align = 8 if dt == jnp.float32 else 16
    Hp = _round_up(H, 128)                      # lane-dense last dim

    if tm is None:
        # Aim for >=2 grid steps (megacore on v7x) with at most 512-row tiles.
        half = _round_up(pl.cdiv(_round_up(M, row_align), 2), row_align)
        tm = max(row_align, min(512, half))
    Mp = _round_up(M, tm)
    grid = Mp // tm

    # Zero-pad inputs / weights to (Mp, Hp) / (Hp, Hp).
    x2d = jnp.zeros((Mp, Hp), dt).at[:M, :H].set(x.reshape(M, H))
    w1p = jnp.zeros((Hp, Hp), w1.dtype).at[:H, :H].set(w1)
    w2p = jnp.zeros((Hp, Hp), w2.dtype).at[:H, :H].set(w2)
    params = jnp.zeros((4, Hp), jnp.float32).at[:, :H].set(
        jnp.stack([b1, b2, gamma, beta]).astype(jnp.float32))

    # Explicit VMEM budget: resident single-buffered weights + double-buffered
    # x/out tiles + f32 intermediate headroom.
    wbytes = jnp.dtype(w1p.dtype).itemsize
    xbytes = jnp.dtype(dt).itemsize
    est = (2 * Hp * Hp * wbytes        # W1, W2 (single-buffered)
           + 8 * Hp * 4                # param pack
           + 4 * tm * Hp * xbytes      # 2x-buffered x and out tiles
           + 6 * tm * Hp * 4)          # f32 intermediates
    vmem_limit = int(min(max(32 * 1024 * 1024, 2 * est), 100 * 1024 * 1024))

    out = pl.pallas_call(
        partial(ffn_kernel, h_dim=H),
        out_shape=jax.ShapeDtypeStruct((Mp, Hp), dt),
        grid_spec=pltpu.PrefetchScalarGridSpec(
            num_scalar_prefetch=0,
            grid=(grid,),
            in_specs=[
                pl.BlockSpec((tm, Hp), lambda i: (i, 0)),                      # x rows
                pl.BlockSpec((Hp, Hp), lambda i: (0, 0),
                             pipeline_mode=pl.Buffered(1)),                    # W1 (resident)
                pl.BlockSpec((Hp, Hp), lambda i: (0, 0),
                             pipeline_mode=pl.Buffered(1)),                    # W2 (resident)
                pl.BlockSpec((4, Hp), lambda i: (0, 0),
                             pipeline_mode=pl.Buffered(1)),                    # b1/b2/gamma/beta
            ],
            out_specs=pl.BlockSpec((tm, Hp), lambda i: (i, 0)),
        ),
        compiler_params=pltpu.CompilerParams(
            dimension_semantics=("parallel",),
            vmem_limit_bytes=vmem_limit),
    )(x2d, w1p, w2p, params)

    return out[:M, :H].reshape(B, S, H)


def reference(x, w1, b1, w2, b2, gamma, beta):
    h = jnp.maximum(x @ w1 + b1, 0.0)
    y = h @ w2 + b2 + x
    mean = jnp.mean(y, axis=-1, keepdims=True)
    var = jnp.mean((y - mean) ** 2, axis=-1, keepdims=True)
    return (y - mean) / jnp.sqrt(var + 1e-6) * gamma + beta


if __name__ == "__main__":
    B, S, H = 2, 8, 32  # batch, seq, hidden_units
    key = jax.random.PRNGKey(0)
    kx, k1, kb1, k2, kb2 = jax.random.split(key, 5)

    x = jax.random.normal(kx, (B, S, H), dtype=jnp.float32)
    # Deterministic parameter init (Linear weights stored as [in, out]).
    bound = 1.0 / (H ** 0.5)
    w1 = jax.random.uniform(k1, (H, H), minval=-bound, maxval=bound, dtype=jnp.float32)
    b1 = jax.random.uniform(kb1, (H,), minval=-bound, maxval=bound, dtype=jnp.float32)
    w2 = jax.random.uniform(k2, (H, H), minval=-bound, maxval=bound, dtype=jnp.float32)
    b2 = jax.random.uniform(kb2, (H,), minval=-bound, maxval=bound, dtype=jnp.float32)
    gamma = jnp.ones((H,), dtype=jnp.float32)
    beta = jnp.zeros((H,), dtype=jnp.float32)

    out = positionwise_feed_forward(x, w1, b1, w2, b2, gamma, beta)
    out = jax.block_until_ready(out)

    ref = reference(x, w1, b1, w2, b2, gamma, beta)
    assert out.shape == (B, S, H)
    assert jnp.allclose(out, ref, atol=1e-5, rtol=1e-5)
    print("KERNEL_OK")
</pallas_src>

<mosaic_0001>
module attributes {stable_mosaic.version = 11 : i64} {
  func.func @ffn_kernel(%arg0: i32, %arg1: memref<8x128xf32, #tpu.memory_space<vmem>>, %arg2: memref<128x128xf32, #tpu.memory_space<vmem>>, %arg3: memref<128x128xf32, #tpu.memory_space<vmem>>, %arg4: memref<4x128xf32, #tpu.memory_space<vmem>>, %arg5: memref<8x128xf32, #tpu.memory_space<vmem>>) attributes {dimension_semantics = [#tpu.dimension_semantics<parallel>], iteration_bounds = array<i64: 2>, scalar_prefetch = 0 : i64, scratch_operands = 0 : i64, tpu.core_type = #tpu.core_type<tc>, window_params = [{transform_indices = @transform_0, window_bounds = array<i64: 8, 128>}, {pipeline_mode = #tpu.pipeline_mode<synchronous>, transform_indices = @transform_1, window_bounds = array<i64: 128, 128>}, {pipeline_mode = #tpu.pipeline_mode<synchronous>, transform_indices = @transform_2, window_bounds = array<i64: 128, 128>}, {pipeline_mode = #tpu.pipeline_mode<synchronous>, transform_indices = @transform_3, window_bounds = array<i64: 4, 128>}, {transform_indices = @transform_4, window_bounds = array<i64: 8, 128>}]} {
    %c0 = arith.constant 0 : index
    %c0_0 = arith.constant 0 : index
    %0 = vector.load %arg1[%c0, %c0_0] : memref<8x128xf32, #tpu.memory_space<vmem>>, vector<8x128xf32>
    %c0_1 = arith.constant 0 : index
    %c0_2 = arith.constant 0 : index
    %1 = vector.load %arg4[%c0_1, %c0_2] : memref<4x128xf32, #tpu.memory_space<vmem>>, vector<1x128xf32>
    %c1 = arith.constant 1 : index
    %c0_3 = arith.constant 0 : index
    %2 = vector.load %arg4[%c1, %c0_3] : memref<4x128xf32, #tpu.memory_space<vmem>>, vector<1x128xf32>
    %c2 = arith.constant 2 : index
    %c0_4 = arith.constant 0 : index
    %3 = vector.load %arg4[%c2, %c0_4] : memref<4x128xf32, #tpu.memory_space<vmem>>, vector<1x128xf32>
    %c3 = arith.constant 3 : index
    %c0_5 = arith.constant 0 : index
    %4 = vector.load %arg4[%c3, %c0_5] : memref<4x128xf32, #tpu.memory_space<vmem>>, vector<1x128xf32>
    %c0_6 = arith.constant 0 : index
    %c0_7 = arith.constant 0 : index
    %5 = vector.load %arg2[%c0_6, %c0_7] : memref<128x128xf32, #tpu.memory_space<vmem>>, vector<128x128xf32>
    %cst = arith.constant dense<0.000000e+00> : vector<8x128xf32>
    %6 = tpu.matmul %0, %5, %cst {dimension_numbers = #tpu.dot_dimension_numbers<[1], [0], [0], [1], [0, 0, 1, 1], [], []>} : vector<8x128xf32>, vector<128x128xf32>, vector<8x128xf32> -> vector<8x128xf32>
    %7 = vector.broadcast %1 : vector<1x128xf32> to vector<8x128xf32>
    %8 = arith.addf %6, %7 : vector<8x128xf32>
    %cst_8 = arith.constant 0.000000e+00 : f32
    %9 = vector.broadcast %cst_8 : f32 to vector<8x128xf32>
    %10 = arith.maximumf %8, %9 : vector<8x128xf32>
    %c0_9 = arith.constant 0 : index
    %c0_10 = arith.constant 0 : index
    %11 = vector.load %arg3[%c0_9, %c0_10] : memref<128x128xf32, #tpu.memory_space<vmem>>, vector<128x128xf32>
    %cst_11 = arith.constant dense<0.000000e+00> : vector<8x128xf32>
    %12 = tpu.matmul %10, %11, %cst_11 {dimension_numbers = #tpu.dot_dimension_numbers<[1], [0], [0], [1], [0, 0, 1, 1], [], []>} : vector<8x128xf32>, vector<128x128xf32>, vector<8x128xf32> -> vector<8x128xf32>
    %13 = vector.broadcast %2 : vector<1x128xf32> to vector<8x128xf32>
    %14 = arith.addf %12, %13 : vector<8x128xf32>
    %15 = arith.addf %14, %0 : vector<8x128xf32>
    %16 = tpu.iota {dimensions = array<i32: 1>} : vector<1x128xi32>
    %c32_i32 = arith.constant 32 : i32
    %17 = vector.broadcast %c32_i32 : i32 to vector<1x128xi32>
    %18 = arith.cmpi slt, %16, %17 : vector<1x128xi32>
    %19 = arith.extui %18 : vector<1x128xi1> to vector<1x128xi32>
    %20 = arith.sitofp %19 : vector<1x128xi32> to vector<1x128xf32>
    %cst_12 = arith.constant dense<0.000000e+00> : vector<8xf32>
    %21 = vector.multi_reduction <add>, %15, %cst_12 [1] : vector<8x128xf32> to vector<8xf32>
    %22 = vector.shape_cast %21 : vector<8xf32> to vector<8x1xf32>
    %cst_13 = arith.constant 3.125000e-02 : f32
    %23 = vector.broadcast %cst_13 : f32 to vector<8x1xf32>
    %24 = arith.mulf %22, %23 : vector<8x1xf32>
    %25 = vector.broadcast %24 : vector<8x1xf32> to vector<8x128xf32>
    %26 = arith.subf %15, %25 : vector<8x128xf32>
    %27 = vector.broadcast %20 : vector<1x128xf32> to vector<8x128xf32>
    %28 = arith.mulf %26, %27 : vector<8x128xf32>
    %29 = arith.mulf %28, %28 : vector<8x128xf32>
    %cst_14 = arith.constant dense<0.000000e+00> : vector<8xf32>
    %30 = vector.multi_reduction <add>, %29, %cst_14 [1] : vector<8x128xf32> to vector<8xf32>
    %31 = vector.shape_cast %30 : vector<8xf32> to vector<8x1xf32>
    %cst_15 = arith.constant 3.125000e-02 : f32
    %32 = vector.broadcast %cst_15 : f32 to vector<8x1xf32>
    %33 = arith.mulf %31, %32 : vector<8x1xf32>
    %cst_16 = arith.constant 9.99999997E-7 : f32
    %34 = vector.broadcast %cst_16 : f32 to vector<8x1xf32>
    %35 = arith.addf %33, %34 : vector<8x1xf32>
    %36 = math.rsqrt %35 : vector<8x1xf32>
    %37 = vector.broadcast %36 : vector<8x1xf32> to vector<8x128xf32>
    %38 = arith.mulf %28, %37 : vector<8x128xf32>
    %39 = vector.broadcast %3 : vector<1x128xf32> to vector<8x128xf32>
    %40 = arith.mulf %38, %39 : vector<8x128xf32>
    %41 = vector.broadcast %4 : vector<1x128xf32> to vector<8x128xf32>
    %42 = arith.addf %40, %41 : vector<8x128xf32>
    %c0_17 = arith.constant 0 : index
    %c0_18 = arith.constant 0 : index
    %43 = vector.load %arg5[%c0_17, %c0_18] : memref<8x128xf32, #tpu.memory_space<vmem>>, vector<8x128xf32>
    tpu.vector_store %arg5[%c0_17, %c0_18], %42 {strides = array<i32>} : memref<8x128xf32, #tpu.memory_space<vmem>>, vector<8x128xf32>,
    return
  }
  func.func @transform_0(%arg0: i32) -> (i32, i32) {
    %c0_i32 = arith.constant 0 : i32
    %c0_i32_0 = arith.constant 0 : i32
    return %arg0, %c0_i32 : i32, i32
  }
  func.func @transform_1(%arg0: i32) -> (i32, i32) {
    %c0_i32 = arith.constant 0 : i32
    %c0_i32_0 = arith.constant 0 : i32
    %c0_i32_1 = arith.constant 0 : i32
    return %c0_i32, %c0_i32_0 : i32, i32
  }
  func.func @transform_2(%arg0: i32) -> (i32, i32) {
    %c0_i32 = arith.constant 0 : i32
    %c0_i32_0 = arith.constant 0 : i32
    %c0_i32_1 = arith.constant 0 : i32
    return %c0_i32, %c0_i32_0 : i32, i32
  }
  func.func @transform_3(%arg0: i32) -> (i32, i32) {
    %c0_i32 = arith.constant 0 : i32
    %c0_i32_0 = arith.constant 0 : i32
    %c0_i32_1 = arith.constant 0 : i32
    return %c0_i32, %c0_i32_0 : i32, i32
  }
  func.func @transform_4(%arg0: i32) -> (i32, i32) {
    %c0_i32 = arith.constant 0 : i32
    %c0_i32_0 = arith.constant 0 : i32
    return %arg0, %c0_i32 : i32, i32
  }
}

</mosaic_0001>

<bundles_post_ra>
// kernel: tpu_custom_call.1
= control target key start
LH: loop header
LB: loop body
LE: loop exit
PB: predicated region body
PF: predicated region fallthrough
CT: control target
= control target key end

     0   :  { %9 = vsyncpa [#allocation3], 0  ;;  %s985_s0 = inlined_call_operand.hbm [shape: f32[16,128], index: 0, kind: input, shape index: {}]   ;;  %s986_s1 = inlined_call_operand.hbm [shape: f32[128,128], index: 1, kind: input, shape index: {}]   ;;  %s987_s2 = inlined_call_operand.hbm [shape: f32[128,128], index: 2, kind: input, shape index: {}]   ;;  %s988_s3 = inlined_call_operand.hbm [shape: f32[4,128], index: 3, kind: input, shape index: {}]   ;;  %s989_s4 = inlined_call_operand.hbm [shape: f32[16,128], index: 4, kind: output, shape index: {}]  }
   0x1   :  { %11 = vsyncpa [#allocation3 + $0x1], 0 }
   0x2   :  { %12 = vsyncpa [#allocation6], 0 }
   0x3   :  { %13 = vsyncpa [#allocation9], 0 }
   0x4   :  { %14 = vsyncpa [#allocation4], 0 }
   0x5   :  { %16 = vsyncpa [#allocation4 + $0x1], 0  ;;  %s822_s15 = smov 0   ;;  %s824_s16 = smov 0  }
   0x6   :  { %s826_s17 = smov 0   ;;  %s828_s18 = smov 0  }
   0x7 LB: > { %s153_s21 = sshll.u32 %s986_s1, 4  ;;  %s846_s22 = sadd.s32 4294967295, %s789_s18   ;;  %s789_s18 = sphi %s828_s18, %s1000_s18   ;;  %s785_s17 = sphi %s826_s17, %s999_s17   ;;  %s781_s16 = sphi %s824_s16, %s998_s16   ;;  %s777_s15 = sphi %s822_s15, %s997_s15   ;;  %s154_s21 = int_to_ptr.hbm [resolvable:$true] %s153_s21 }
   0x8   : > { %p491_p0 = scmp.ge.s32.totalorder %s789_s18, 1  ;;  %p43_p1 = scmp.eq.s32.totalorder %s846_s22, 0 }
   0x9   : > { %p142_p2 = scmp.lt.s32.totalorder %s789_s18, 3  ;;  %s791_s24 = smov [#allocation5]  }
   0xa   : > { %s155_s25 = sshll.u32 %s791_s24, 4  ;;  %s167_s28 = sshll.u32 %s987_s2, 4  ;;  %s156_s25 = int_to_ptr.vmem [resolvable:$true] %s155_s25  ;;  %s168_s28 = int_to_ptr.hbm [resolvable:$true] %s167_s28 }
   0xb   : > { %p851_p3 = pnand %p491_p0, %p142_p2  ;;  %s182_s6 = sshll.u32 %s988_s3, 4  ;;  %s183_s6 = int_to_ptr.hbm [resolvable:$true] %s182_s6 }
   0xc   : > { %s792_s7 = smov [#allocation7]   ;;  %s793_s9 = smov 128  }
   0xd   : > { %p525_p4 = pneg %p851_p3  ;;  %s169_s8 = sshll.u32 %s792_s7, 4  ;;  %s170_s8 = int_to_ptr.vmem [resolvable:$true] %s169_s8 }
   0xe   : > { %s794_s10 = smov 8   ;;  %s795_s11 = smov [#allocation8]  }
   0xf   : > { %p863_p6 = pnand %p525_p4, %p43_p1  ;;  %s184_s12 = sshll.u32 %s795_s11, 4  ;;  %s185_s12 = int_to_ptr.vmem [resolvable:$true] %s184_s12 }
  0x10   : > { %s490_s13 = sadd.s32 4294967294, %s789_s18   ;;  %s878_s14 = sadd.s32 1, %s789_s18  }
  0x11   : > { %528 = dma.hbm_to_vmem [thread:$0]  (!%p863_p6), %s154_s21, 2048, %s156_s25, [#allocation6], %s793_s9, %s793_s9, %s794_s10  }
  0x12   : > { %531 = dma.hbm_to_vmem [thread:$0]  (!%p863_p6), %s168_s28, 2048, %s170_s8, [#allocation6], %s793_s9, %s793_s9, %s794_s10  }
  0x13   : > { %534 = dma.hbm_to_vmem [thread:$0]  (!%p863_p6), %s183_s6, 64, %s185_s12, [#allocation9]  }
  0x14   : > { %s29_s19 = sadd.s32 1, %s785_s17  ;;  %s26_s20 = ssub.s32 %s789_s18, %s878_s14 }
  0x15   : > { %p36_p7 = scmp.ne.s32.totalorder %s785_s17, %s781_s16  ;;  %p27_p8 = scmp.eq.s32.totalorder %s26_s20, 0 }
  0x16   : > { %p37_p9 = scmp.eq.s32.totalorder %s789_s18, 0  ;;  %p42_p10 = scmp.ne.s32.totalorder %s781_s16, %s777_s15 }
  0x17   : > { %p129_p11 = scmp.eq.s32.totalorder %s846_s22, 1  ;;  %p135_p0 = scmp.eq.s32.totalorder %s490_s13, 1 }
  0x18   : > { %s890_s21 = scalar_select %p27_p8, %s785_s17, %s29_s19  }
  0x19   : > { %p894_p12 = por %p43_p1, %p42_p10  ;;  %p898_p13 = por %p129_p11, %p36_p7 }
  0x1a   : > { %p38_p2 = por %p37_p9, %p36_p7  ;;  %s195_s26 = sand.u32 1, %s785_s17  }
  0x1b   : > { %p903_p4 = por %p135_p0, %p42_p10  ;;  %p546_p6 = scmp.lt.s32.totalorder %s789_s18, 2 }
  0x1c   : > { %s496_s28 = sshll.u32 %s195_s26, 3  ;;  %s497_s29 = sshll.u32 %s789_s18, 3 }
  0x1d   : > { %s203_s6 = scalar_lea.hbm %s985_s0, %s497_s29  ;;  %s199_s8 = scalar_lea.vmem [#allocation2], %s496_s28 }
  0x1e   : > { %s205_s7 = sshll.u32 %s203_s6, 4  ;;  %s207_s9 = sshll.u32 %s199_s8, 4  ;;  %s206_s7 = int_to_ptr.hbm [resolvable:$true] %s205_s7  ;;  %s208_s9 = int_to_ptr.vmem [resolvable:$true] %s207_s9 }
  0x1f   : > { %p912_p8 = pnand %p546_p6, %p38_p2  ;;  %s196_s11 = scalar_lea.sflag [#allocation3], %s195_s26 }
  0x20   : > { %s685_s12 = sshra.s32 %s206_s7, 4  ;;  %s692_s28 = scalar_lea.hbm %s985_s0, 16  ;;  %s686_s12 = int_to_ptr.hbm [resolvable:$true] %s685_s12 }
  0x21   : > { %s687_s13 = scalar_lea.hbm %s686_s12, 8  ;;  %p689_p9 = pneg %p912_p8 }
  0x22   : > { %p688_p7 = scmp.ne.s32.totalorder %s686_s12, %s687_s13  ;;  %p693_p0 = scmp.lt.s32.totalorder %s686_s12, %s985_s0 }
  0x23   : > { %p694_p2 = scmp.lt.s32.totalorder %s692_s28, %s687_s13 }
  0x24   : > { %p690_p10 = pnand %p689_p9, %p688_p7 }
  0x25   : > { %p695_p6 = por %p694_p2, %p693_p0 }
  0x26   : > { %p691_p11 = pneg %p690_p10 }
  0x28   : > { %p696_p5 = pnand %p695_p6, %p691_p11 }
  0x2a   : > { %699 = shalt.err (!%p696_p5)
}
  0x2b   : > { %538 = dma.hbm_to_vmem [thread:$0]  (!%p912_p8), %s206_s7, 128, %s208_s9, %s196_s11  }
  0x2c   : > { %216 = sbr.rel (%p851_p3) target bundleno = 617 (0x269), region = 36  ;;  %s929_s26 = sand.u32 (!%p851_p3), 1, %s781_s16  }
  0x2d   : > { %s499_s5 = sshll.u32 (!%p851_p3), %s929_s26, 3  ;;  %s219_s6 = scalar_lea.sflag (!%p851_p3), [#allocation3], %s929_s26 }
  0x2e   : > { %s935_s8 = scalar_lea.vmem (!%p851_p3), [#allocation2], %s499_s5 }
  0x31   : > { %760 = dma.done.wait (%p894_p12), %s219_s6, 128  }
  0x32   : > { %762 = vsyncadd (%p894_p12), %s219_s6, 4294967168 }
  0x33   : > { %764 = dma.done.wait (%p43_p1), [#allocation6], 4096  }
  0x34   : > { %766 = vsyncadd (%p43_p1), [#allocation6], 4294963200 }
  0x35   : > { %768 = dma.done.wait (%p43_p1), [#allocation9], 64  }
  0x36   : > { %770 = vsyncadd (%p43_p1), [#allocation9], 4294967232  ;;  %v283_v0 = vld [vmem:[#allocation5 + $0x78] sm:$0xff]  ;;  %v282_v1 = vld [vmem:[#allocation5 + $0x70] sm:$0xff]  ;;  %v344_v41 = vlaneseq  ;;  %v796_v45 = vmov 0.0   ;;  %s506_s23 = sshll.u32 %s846_s22, 3 }
  0x37   : > { %285 = vmatpush.msra.mxu0 %v283_v0  ;;  %v281_v2 = vld [vmem:[#allocation5 + $0x68] sm:$0xff]  ;;  %v280_v3 = vld [vmem:[#allocation5 + $0x60] sm:$0xff]  ;;  %v321_v4 = vld [vmem:[#allocation7 + $0x78] sm:$0xff]  ;;  %s386_s9 = scalar_lea.hbm %s989_s4, %s506_s23  ;;  %s262_s10 = scalar_lea.vmem [#allocation10], %s499_s5 }
  0x38   : > { %v279_v5 = vld [vmem:[#allocation5 + $0x58] sm:$0xff]  ;;  %323 = vmatpush.msra.mxu1 %v321_v4  ;;  %v320_v6 = vld [vmem:[#allocation7 + $0x70] sm:$0xff]  ;;  %v319_v7 = vld [vmem:[#allocation7 + $0x68] sm:$0xff]  ;;  %v345_v42 = vand.u32 127, %v344_v41  ;;  %s388_s11 = sshll.u32 %s262_s10, 4  ;;  %s390_s12 = sshll.u32 %s386_s9, 4  ;;  %s389_s11 = int_to_ptr.vmem [resolvable:$true] %s388_s11  ;;  %s391_s12 = int_to_ptr.hbm [resolvable:$true] %s390_s12 }
  0x39   : > { %286 = vmatpush.msra.mxu0 %v282_v1  ;;  %v278_v8 = vld [vmem:[#allocation5 + $0x50] sm:$0xff]  ;;  %v318_v9 = vld [vmem:[#allocation7 + $0x60] sm:$0xff]  ;;  %v277_v10 = vld [vmem:[#allocation5 + $0x48] sm:$0xff]  ;;  %s376_s22 = scalar_lea.sflag [#allocation4], %s929_s26  ;;  %s729_s13 = sshra.s32 %s391_s12, 4  ;;  %s730_s13 = int_to_ptr.hbm [resolvable:$true] %s729_s13 }
  0x3a   : > { %324 = vmatpush.msra.mxu1 %v320_v6  ;;  %v317_v11 = vld [vmem:[#allocation7 + $0x58] sm:$0xff]  ;;  %v276_v12 = vld [vmem:[#allocation5 + $0x40] sm:$0xff]  ;;  %v316_v13 = vld [vmem:[#allocation7 + $0x50] sm:$0xff]  ;;  %vm346_vm0 = vcmp.lt.s32.totalorder %v345_v42, 32  ;;  %s731_s19 = scalar_lea.hbm %s730_s13, 8  ;;  %s735_s29 = scalar_lea.hbm %s989_s4, 16 }
  0x3b   : > { %287 = vmatpush.msra.mxu0 %v281_v2  ;;  %v275_v14 = vld [vmem:[#allocation5 + $0x38] sm:$0xff]  ;;  %v315_v15 = vld [vmem:[#allocation7 + $0x48] sm:$0xff]  ;;  %v274_v16 = vld [vmem:[#allocation5 + $0x30] sm:$0xff]  ;;  %v504_v46 = vsel %vm346_vm0, 1.0, %v796_v45  ;;  %p732_p1 = scmp.ne.s32.totalorder %s730_s13, %s731_s19  ;;  %p736_p12 = scmp.lt.s32.totalorder %s730_s13, %s989_s4 }
  0x3c   : > { %325 = vmatpush.msra.mxu1 %v319_v7  ;;  %v314_v17 = vld [vmem:[#allocation7 + $0x40] sm:$0xff]  ;;  %v273_v18 = vld [vmem:[#allocation5 + $0x28] sm:$0xff]  ;;  %v313_v19 = vld [vmem:[#allocation7 + $0x38] sm:$0xff]  ;;  %p737_p8 = scmp.lt.s32.totalorder %s735_s29, %s731_s19 }
  0x3d   : > { %288 = vmatpush.msra.mxu0 %v280_v3  ;;  %v272_v20 = vld [vmem:[#allocation5 + $0x20] sm:$0xff]  ;;  %v312_v21 = vld [vmem:[#allocation7 + $0x30] sm:$0xff]  ;;  %v271_v22 = vld [vmem:[#allocation5 + $0x18] sm:$0xff]  ;;  %p733_p3 = pnand %p732_p1, %p898_p13 }
  0x3e   : > { %326 = vmatpush.msra.mxu1 %v318_v9  ;;  %v311_v23 = vld [vmem:[#allocation7 + $0x28] sm:$0xff]  ;;  %v270_v24 = vld [vmem:[#allocation5 + $0x10] sm:$0xff]  ;;  %v310_v25 = vld [vmem:[#allocation7 + $0x20] sm:$0xff]  ;;  %p738_p7 = por %p737_p8, %p736_p12 }
  0x3f   : > { %289 = vmatpush.msra.mxu0 %v279_v5  ;;  %v269_v26 = vld [vmem:[#allocation5 + $0x8] sm:$0xff]  ;;  %v309_v27 = vld [vmem:[#allocation7 + $0x18] sm:$0xff]  ;;  %v268_v28 = vld [vmem:[#allocation5] sm:$0xff]  ;;  %p734_p5 = pneg %p733_p3 }
  0x40   : > { %327 = vmatpush.msra.mxu1 %v317_v11  ;;  %v263_v29 = vld [vmem:[%s935_s8] sm:$0xff]  ;;  %v307_v31 = vld [vmem:[#allocation7 + $0x8] sm:$0xff]  ;;  %v306_v32 = vld [vmem:[#allocation7] sm:$0xff] }
  0x41   : > { %290 = vmatpush.msra.mxu0 %v278_v8  ;;  %v308_v30 = vld [vmem:[#allocation7 + $0x10] sm:$0xff]  ;;  %v589_v33 = vld [vmem:[#allocation8] ss:$0 sm:$0xff]  ;;  %v590_v37 = vld [vmem:[#allocation8 + $0x1] ss:$0 sm:$0xff]  ;;  %p739_p9 = pnand %p738_p7, %p734_p5 }
  0x42   : > { %328 = vmatpush.msra.mxu1 %v316_v13  ;;  %v591_v59 = vld [vmem:[#allocation8 + $0x2] ss:$0 sm:$0xff]  ;;  %v592_v62 = vld [vmem:[#allocation8 + $0x3] ss:$0 sm:$0xff] }
  0x43   : > { %291 = vmatpush.msra.mxu0 %v277_v10 }
  0x44   : > { %329 = vmatpush.msra.mxu1 %v315_v15 }
  0x45   : > { %292 = vmatpush.msra.mxu0 %v276_v12 }
  0x46   : > { %330 = vmatpush.msra.mxu1 %v314_v17 }
  0x47   : > { %293 = vmatpush.msra.mxu0 %v275_v14 }
  0x48   : > { %331 = vmatpush.msra.mxu1 %v313_v19 }
  0x49   : > { %294 = vmatpush.msra.mxu0 %v274_v16 }
  0x4a   : > { %332 = vmatpush.msra.mxu1 %v312_v21 }
  0x4b   : > { %295 = vmatpush.msra.mxu0 %v273_v18 }
  0x4c   : > { %333 = vmatpush.msra.mxu1 %v311_v23 }
  0x4d   : > { %296 = vmatpush.msra.mxu0 %v272_v20 }
  0x4e   : > { %334 = vmatpush.msra.mxu1 %v310_v25 }
  0x4f   : > { %297 = vmatpush.msra.mxu0 %v271_v22 }
  0x50   : > { %335 = vmatpush.msra.mxu1 %v309_v27 }
  0x51   : > { %298 = vmatpush.msra.mxu0 %v270_v24 }
  0x52   : > { %336 = vmatpush.msra.mxu1 %v308_v30 }
  0x53   : > { %299 = vmatpush.msra.mxu0 %v269_v26 }
  0x54   : > { %337 = vmatpush.msra.mxu1 %v307_v31 }
  0x55   : > { %300 = vmatpush.msra.mxu0 %v268_v28 }
  0x56   : > { %301 = vmatmul.f32.vlgmr.msra.gmra.mxu0 %v263_v29  ;;  %338 = vmatpush.msra.mxu1 %v306_v32 }
  0xd3   : > { %v302_v34 = vpop.f32.mrf.mxu0 }
  0xd4   : > { %v303_v35 = vadd.f32 %v589_v33, %v302_v34 }
  0xd6   : > { %v305_v36 = vmax.f32 %v303_v35, 0.0 }
  0xd8   : > { %339 = vmatmul.f32.vlgmr.msra.gmra.mxu1 %v305_v36 }
 0x155   : > { %v340_v38 = vpop.f32.mrf.mxu1 }
 0x156   : > { %v341_v39 = vadd.f32 %v590_v37, %v340_v38 }
 0x158   : > { %v343_v40 = vadd.f32 %v341_v39, %v263_v29 }
 0x15a   : > { %349 = vadd.xlane.f32.xlu0 %v343_v40 }
 0x1cd   : > { %v350_v43 = vpop.xlane.xlu0 %349 }
 0x1ce   : > { %v351_v44 = vmul.f32 0.03125, %v350_v43 }
 0x1d0   : > { %v352_v47 = vsub.f32 %v343_v40, %v351_v44 }
 0x1d2   : > { %v353_v48 = vmul.f32 %v504_v46, %v352_v47 }
 0x1d4   : > { %v354_v49 = vmul.f32 %v353_v48, %v353_v48 }
 0x1d6   : > { %355 = vadd.xlane.f32.xlu0 %v354_v49 }
 0x249   : > { %v356_v50 = vpop.xlane.xlu0 %355 }
 0x24a   : > { %v357_v51 = vmul.f32 0.03125, %v356_v50 }
 0x24c   : > { %v358_v52 = vadd.f32 1e-06, %v357_v51 }
 0x24e   : > { %593 = vrsqrt.f32 %v358_v52  ;;  %vm365_vm2 = vweird.f32 %v358_v52 }
 0x254   : > { %v594_v53 = vpop.eup %593 }
 0x255   : > { %v360_v54 = vmul.f32 %v594_v53, %v358_v52  ;;  %vm366_vm1 = vweird.f32 %v594_v53 }
 0x256   : > { %vm367_vm3 = vmor %vm365_vm2, %vm366_vm1 }
 0x257   : > { %v361_v55 = vmul.f32 %v594_v53, %v360_v54 }
 0x259   : > { %v362_v56 = vmul.f32 0.5, %v361_v55 }
 0x25b   : > { %v363_v57 = vsub.f32 1.5, %v362_v56 }
 0x25d   : > { %v364_v58 = vmul.f32 %v594_v53, %v363_v57 }
 0x25f   : > { %v368_v60 = vsel %vm367_vm3, %v594_v53, %v364_v58 }
 0x260   : > { %v369_v61 = vmul.f32 %v368_v60, %v353_v48 }
 0x262   : > { %v371_v63 = vmul.f32 %v591_v59, %v369_v61 }
 0x264   : > { %v373_v0 = vadd.f32 %v592_v62, %v371_v63 }
 0x266   : > { %374 = vst [vmem:[%s262_s10] sm:$0xff] %v373_v0 }
 0x267   : > { %742 = shalt.err (!%p739_p9)
}
 0x268   : > { %523 = dma.vmem_to_hbm [thread:$0]  (%p898_p13), %s389_s11, 128, %s391_s12, %s376_s22  }
 0x269 PF: > { %s402_s26 = sand.u32 1, %s777_s15   ;;  %p996_p10 = scmp.ge.s32.totalorder %s789_s18, 2 }
 0x26a   : > { %s403_s6 = scalar_lea.sflag [#allocation4], %s402_s26 }
 0x26b   : > { %p540_p11 = pnand %p996_p10, %p903_p4 }
 0x26d   : > { %p541_p0 = pneg %p540_p11 }
 0x26f   : > { %772 = dma.done.wait (%p541_p0), %s403_s6, 128  }
 0x270   : > { %774 = vsyncadd (%p541_p0), %s403_s6, 4294967168  ;;  %p19_p2 = scmp.ge.s32.totalorder %s878_s14, 4   ;;  %s997_s15 = smov %s781_s16 }
 0x271   : > { %s998_s16 = smov %s785_s17  ;;  %s999_s17 = smov %s890_s21 }
 0x272   : > { %s1000_s18 = smov %s878_s14  ;;  %21 = sbr.rel (!%p19_p2) target bundleno = 7 (0x7), region = 93 }
 0x277   :  { %409 = vsyncpa [#allocation3], 1 }
 0x278   :  { %411 = vsyncpa [#allocation3 + $0x1], 1 }
 0x279   :  { %412 = vsyncpa [#allocation6], 1 }
 0x27a   :  { %413 = vsyncpa [#allocation9], 1 }
 0x27b   :  { %414 = vsyncpa [#allocation4], 1 }
 0x27c   :  { %416 = vsyncpa [#allocation4 + $0x1], 1 }

</bundles_post_ra>
